<compile_context>
chip_gen: v5e
topology: v5e:2x2
jax: 0.10.0
libtpu: 0.0.40
codegen_flags: <defaults>
</compile_context>

<pallas_src>
import jax
import jax.numpy as jnp
from jax import lax
from jax.experimental import pallas as pl
from jax.experimental.pallas import tpu as pltpu


def _round_up(x, m):
    return -(-x // m) * m


def _make_stats_kernel(n_rows, tile_rows, use_mxu_sum):
    """Build the streaming per-lane statistics kernel body.

    n_rows:      total reduction rows per lane group (after any row fold).
    tile_rows:   rows handled per grid step along the reduction axis.
    use_mxu_sum: offload row sums to the MXU (sub-32-bit inputs; exact in f32).
    """
    num_k = -(-n_rows // tile_rows)
    ragged = (n_rows % tile_rows) != 0

    def kernel(e_ref, stats_ref):
        k = pl.program_id(2)
        x = e_ref[...]                                   # (Bt, tN, Lc), input dtype
        bt, tn, lc = x.shape

        if ragged:
            tail = n_rows - (num_k - 1) * tile_rows
            valid = jnp.where(k == num_k - 1, tail, tn)  # rows in this tile
            row_ids = lax.broadcasted_iota(jnp.int32, (1, tn, 1), 1)
            mask = row_ids < valid
            nb = valid.astype(jnp.float32)
        else:
            mask = None
            nb = jnp.float32(tn)

        # min / max in the input dtype (exact; bf16 packs 2 elems per vreg).
        if mask is None:
            tile_min = jnp.min(x, axis=1, keepdims=True).astype(jnp.float32)
            tile_max = jnp.max(x, axis=1, keepdims=True).astype(jnp.float32)
        else:
            fmax = jnp.asarray(jnp.finfo(x.dtype).max, x.dtype)
            fmin = jnp.asarray(jnp.finfo(x.dtype).min, x.dtype)
            tile_min = jnp.min(jnp.where(mask, x, fmax), axis=1,
                               keepdims=True).astype(jnp.float32)
            tile_max = jnp.max(jnp.where(mask, x, fmin), axis=1,
                               keepdims=True).astype(jnp.float32)

        # Row sum -> per-lane tile mean.
        if use_mxu_sum:
            xs = x if mask is None else jnp.where(mask, x, jnp.asarray(0, x.dtype))
            ones_rows = jnp.ones((bt, 8, tn), dtype=x.dtype)   # 8 rows: sublane-aligned M
            sums8 = lax.dot_general(
                ones_rows, xs,
                dimension_numbers=(((2,), (1,)), ((0,), (0,))),
                preferred_element_type=jnp.float32)            # (Bt, 8, Lc)
            tile_sum = sums8[:, 0:1, :]
        else:
            # TODO(synk): route the f32 row sums through the MXU too once a
            # >= 3-pass f32 matmul precision can be requested inside Mosaic.
            x32 = x.astype(jnp.float32)
            xs32 = x32 if mask is None else jnp.where(mask, x32, 0.0)
            tile_sum = jnp.sum(xs32, axis=1, keepdims=True)
        tile_mean = tile_sum / nb

        centered = x.astype(jnp.float32) - tile_mean
        if mask is not None:
            centered = jnp.where(mask, centered, 0.0)
        tile_m2 = jnp.sum(centered * centered, axis=1, keepdims=True)

        # Packed accumulator rows: 0=mean, 1=M2, 2=min, 3=max, 4..7 padding.
        @pl.when(k == 0)
        def _init():
            stats_ref[:, 0:1, :] = tile_mean
            stats_ref[:, 1:2, :] = tile_m2
            stats_ref[:, 2:3, :] = tile_min
            stats_ref[:, 3:4, :] = tile_max
            stats_ref[:, 4:8, :] = jnp.zeros((bt, 4, lc), jnp.float32)

        @pl.when(k > 0)
        def _combine():
            # Chan parallel-variance combine: (running, na rows) (+) (tile, nb).
            # All tiles before the (possibly ragged) last one are full.
            na = (k * tile_rows).astype(jnp.float32)
            scale = nb / (na + nb)
            run_mean = stats_ref[:, 0:1, :]
            delta = tile_mean - run_mean
            stats_ref[:, 0:1, :] = run_mean + delta * scale
            stats_ref[:, 1:2, :] = (stats_ref[:, 1:2, :] + tile_m2
                                    + delta * delta * (na * scale))
            stats_ref[:, 2:3, :] = jnp.minimum(stats_ref[:, 2:3, :], tile_min)
            stats_ref[:, 3:4, :] = jnp.maximum(stats_ref[:, 3:4, :], tile_max)

    return kernel


def _choose_row_fold(n1, lanes):
    """Fold g | n1 row groups into the lane axis until rows are >= 128 lanes."""
    g = 1
    while lanes * g < 128:
        nxt = None
        for f in (2, 3, 5, 7):
            if (n1 // g) % f == 0:
                nxt = f
                break
        if nxt is None:
            break
        g *= nxt
    return g


def _choose_row_tile(n_rows, row_bytes, sublane, target_bytes):
    """Largest sublane-aligned row tile under the block budget (no divisor req)."""
    if n_rows * row_bytes <= target_bytes:
        return n_rows                       # whole reduction axis per block
    max_rows = max(int(target_bytes // row_bytes), 1)
    t = (max_rows // sublane) * sublane
    t = max(t, sublane)
    return min(t, n_rows)


def _choose_batch_tile(batch, n_rows, tile_rows, row_bytes, target_bytes):
    """Batch-block only when whole per-batch slabs are tiny; keep >=2 grid steps."""
    if tile_rows != n_rows:
        return 1
    slab = n_rows * row_bytes
    for b in range(batch, 0, -1):
        if batch % b == 0 and b * slab <= target_bytes and (batch // b >= 2 or batch == 1):
            return b
    return 1


def etoy_forward(E, W_t, bias, *, target_block_bytes=8 << 20):
    """E: (B, N1, N2, d) floating, W_t: (4d, dy), bias: (dy,) -> (B, dy) f32."""
    B, N1, N2, d = E.shape
    four_d, dy = W_t.shape
    assert four_d == 4 * d
    assert jnp.issubdtype(E.dtype, jnp.floating)

    itemsize = jnp.dtype(E.dtype).itemsize
    sublane = 32 // itemsize                # f32: 8, bf16/f16: 16, 1-byte: 32

    # ---- lane-dense layout (pure row-major reshape, no copy) ---------------
    fold = _choose_row_fold(N1, N2 * d)
    n_rows = N1 // fold                     # reduction rows per lane group
    L = fold * N2 * d                       # lanes per row
    E2 = E.reshape(B, n_rows, L)

    # ---- VMEM budget --------------------------------------------------------
    try:
        vmem_cap = int(pltpu.get_tpu_info().vmem_capacity_bytes)
    except Exception:
        vmem_cap = 64 << 20                 # assume the smallest (v7x per-core)
    target_block_bytes = int(min(target_block_bytes, vmem_cap // 4))

    # ---- tiling -------------------------------------------------------------
    row_bytes = _round_up(L, 128) * itemsize
    tile_rows = _choose_row_tile(n_rows, row_bytes, sublane, target_block_bytes)
    Bt = _choose_batch_tile(B, n_rows, tile_rows, row_bytes, target_block_bytes)
    num_b = B // Bt
    num_k = -(-n_rows // tile_rows)

    # Megacore: if the batch axis has < 2 parallel steps, split the lane axis
    # into 2 independent chunks (per-lane stats need no combine).
    lane_chunk = L
    if num_b < 2 and L % 256 == 0:
        lane_chunk = L // 2
    num_l = L // lane_chunk

    padded_lc = _round_up(lane_chunk, 128)
    in_block = Bt * _round_up(tile_rows, sublane) * padded_lc * itemsize
    out_block = Bt * 8 * padded_lc * 4
    vmem_limit = max(2 * in_block + 2 * out_block + (8 << 20), 32 << 20)
    vmem_limit = int(min(vmem_limit, (vmem_cap * 3) // 4))

    use_mxu_sum = itemsize < 4              # bf16/f16: exact f32-accumulated MXU sum
    kernel = _make_stats_kernel(n_rows, tile_rows, use_mxu_sum)

    stats = pl.pallas_call(
        kernel,
        out_shape=jax.ShapeDtypeStruct((B, 8, L), jnp.float32),
        grid_spec=pltpu.PrefetchScalarGridSpec(
            num_scalar_prefetch=0,
            grid=(num_b, num_l, num_k),
            in_specs=[pl.BlockSpec((Bt, tile_rows, lane_chunk),
                                   lambda b, l, k: (b, k, l))],
            out_specs=pl.BlockSpec((Bt, 8, lane_chunk),
                                   lambda b, l, k: (b, 0, l)),
        ),
        compiler_params=pltpu.CompilerParams(
            dimension_semantics=("parallel", "parallel", "arbitrary"),
            vmem_limit_bytes=vmem_limit,
        ),
    )(E2)

    # ---- finalize (tiny, plain XLA) -----------------------------------------
    G = fold * N2                           # lane groups per feature
    mean_g = stats[:, 0, :].reshape(B, G, d)
    m2_g = stats[:, 1, :].reshape(B, G, d)
    min_g = stats[:, 2, :].reshape(B, G, d)
    max_g = stats[:, 3, :].reshape(B, G, d)

    mean = jnp.mean(mean_g, axis=1)                                     # (B, d)
    m2 = jnp.sum(m2_g, axis=1) + jnp.float32(n_rows) * jnp.sum(
        jnp.square(mean_g - mean[:, None, :]), axis=1)
    # torch.std default is unbiased (n-1); n == 1 yields NaN, matching torch.
    std = jnp.sqrt(m2 / jnp.float32(N1 * N2 - 1))
    mi = jnp.min(min_g, axis=1)
    ma = jnp.max(max_g, axis=1)

    z = jnp.concatenate([mean, mi, ma, std], axis=-1)                   # (B, 4d)
    return z @ W_t.astype(jnp.float32) + bias.astype(jnp.float32)


def etoy_reference(E, W_t, bias):
    E = E.astype(jnp.float32)
    m = jnp.mean(E, axis=(1, 2))
    mi = jnp.min(E, axis=(1, 2))
    ma = jnp.max(E, axis=(1, 2))
    std = jnp.std(E, axis=(1, 2), ddof=1)
    z = jnp.concatenate([m, mi, ma, std], axis=-1)
    return z @ W_t + bias


if __name__ == "__main__":
    key = jax.random.PRNGKey(0)
    k_e, k_w, k_b, k_e2, k_e3 = jax.random.split(key, 5)

    # Small shapes consistent with the module: E (B, n, n, d), Linear(4d -> dy).
    B, N, d, dy = 2, 8, 16, 8
    E = jax.random.normal(k_e, (B, N, N, d), dtype=jnp.float32)
    bound = (4 * d) ** -0.5
    W_t = jax.random.uniform(k_w, (4 * d, dy), jnp.float32, -bound, bound)
    bias = jax.random.uniform(k_b, (dy,), jnp.float32, -bound, bound)

    out = jax.block_until_ready(etoy_forward(E, W_t, bias))
    ref = etoy_reference(E, W_t, bias)
    assert out.shape == (B, dy)
    assert jnp.allclose(out, ref, rtol=1e-4, atol=1e-4), "mismatch (single-tile path)"

    # Larger n with a small block budget: multiple 'arbitrary' reduction steps
    # -> exercises the Chan/Welford combine path.
    n_big = 32
    E_big = jax.random.normal(k_e2, (B, n_big, n_big, d), jnp.float32) * 3.0 + 5.0
    out_big = jax.block_until_ready(
        etoy_forward(E_big, W_t, bias, target_block_bytes=16 * 1024))
    ref_big = etoy_reference(E_big, W_t, bias)
    assert jnp.allclose(out_big, ref_big, rtol=1e-4, atol=1e-4), "mismatch (tiled path)"

    # bf16 input whose row count is not a multiple of the row tile: exercises
    # the ragged-tail mask, input-dtype min/max and the MXU-offloaded row sums.
    n_rag = 40
    E_bf = (jax.random.normal(k_e3, (B, n_rag, n_rag, d), jnp.float32) * 2.0 + 1.0
            ).astype(jnp.bfloat16)
    out_bf = jax.block_until_ready(
        etoy_forward(E_bf, W_t, bias, target_block_bytes=8 * 1024))
    ref_bf = etoy_reference(E_bf, W_t, bias)
    assert jnp.allclose(out_bf, ref_bf, rtol=1e-3, atol=1e-3), "mismatch (bf16/ragged path)"

    print("KERNEL_OK")
</pallas_src>

<mosaic_0001>
module attributes {stable_mosaic.version = 11 : i64} {
  func.func @kernel(%arg0: i32, %arg1: i32, %arg2: i32, %arg3: memref<1x8x128xf32, #tpu.memory_space<vmem>>, %arg4: memref<1x8x128xf32, #tpu.memory_space<vmem>>) attributes {dimension_semantics = [#tpu.dimension_semantics<parallel>, #tpu.dimension_semantics<parallel>, #tpu.dimension_semantics<arbitrary>], iteration_bounds = array<i64: 2, 1, 1>, scalar_prefetch = 0 : i64, scratch_operands = 0 : i64, tpu.core_type = #tpu.core_type<tc>, window_params = [{transform_indices = @transform_0, window_bounds = array<i64: 1, 8, 128>}, {transform_indices = @transform_1, window_bounds = array<i64: 1, 8, 128>}]} {
    %c0 = arith.constant 0 : index
    %c0_0 = arith.constant 0 : index
    %c0_1 = arith.constant 0 : index
    %0 = vector.load %arg3[%c0, %c0_0, %c0_1] : memref<1x8x128xf32, #tpu.memory_space<vmem>>, vector<1x8x128xf32>
    %cst = arith.constant dense<0x7F800000> : vector<1x128xf32>
    %1 = vector.multi_reduction <minimumf>, %0, %cst [1] : vector<1x8x128xf32> to vector<1x128xf32>
    %2 = vector.shape_cast %1 : vector<1x128xf32> to vector<1x1x128xf32>
    %cst_2 = arith.constant dense<0xFF800000> : vector<1x128xf32>
    %3 = vector.multi_reduction <maximumf>, %0, %cst_2 [1] : vector<1x8x128xf32> to vector<1x128xf32>
    %4 = vector.shape_cast %3 : vector<1x128xf32> to vector<1x1x128xf32>
    %cst_3 = arith.constant dense<0.000000e+00> : vector<1x128xf32>
    %5 = vector.multi_reduction <add>, %0, %cst_3 [1] : vector<1x8x128xf32> to vector<1x128xf32>
    %6 = vector.shape_cast %5 : vector<1x128xf32> to vector<1x1x128xf32>
    %cst_4 = arith.constant 8.000000e+00 : f32
    %7 = vector.broadcast %cst_4 : f32 to vector<1x1x128xf32>
    %8 = arith.divf %6, %7 : vector<1x1x128xf32>
    %9 = vector.broadcast %8 : vector<1x1x128xf32> to vector<1x8x128xf32>
    %10 = arith.subf %0, %9 : vector<1x8x128xf32>
    %11 = arith.mulf %10, %10 : vector<1x8x128xf32>
    %cst_5 = arith.constant dense<0.000000e+00> : vector<1x128xf32>
    %12 = vector.multi_reduction <add>, %11, %cst_5 [1] : vector<1x8x128xf32> to vector<1x128xf32>
    %13 = vector.shape_cast %12 : vector<1x128xf32> to vector<1x1x128xf32>
    %c0_i32 = arith.constant 0 : i32
    %14 = arith.cmpi eq, %arg2, %c0_i32 : i32
    %15 = arith.extui %14 : i1 to i32
    %c0_i32_6 = arith.constant 0 : i32
    %16 = arith.cmpi ne, %15, %c0_i32_6 : i32
    scf.if %16 {
      %c0_10 = arith.constant 0 : index
      %c0_11 = arith.constant 0 : index
      %c0_12 = arith.constant 0 : index
      %20 = vector.load %arg4[%c0_10, %c0_11, %c0_12] : memref<1x8x128xf32, #tpu.memory_space<vmem>>, vector<1x1x128xf32>
      tpu.vector_store %arg4[%c0_10, %c0_11, %c0_12], %8 {strides = array<i32>} : memref<1x8x128xf32, #tpu.memory_space<vmem>>, vector<1x1x128xf32>,
      %c0_13 = arith.constant 0 : index
      %c1 = arith.constant 1 : index
      %c0_14 = arith.constant 0 : index
      %21 = vector.load %arg4[%c0_13, %c1, %c0_14] : memref<1x8x128xf32, #tpu.memory_space<vmem>>, vector<1x1x128xf32>
      tpu.vector_store %arg4[%c0_13, %c1, %c0_14], %13 {strides = array<i32>} : memref<1x8x128xf32, #tpu.memory_space<vmem>>, vector<1x1x128xf32>,
      %c0_15 = arith.constant 0 : index
      %c2 = arith.constant 2 : index
      %c0_16 = arith.constant 0 : index
      %22 = vector.load %arg4[%c0_15, %c2, %c0_16] : memref<1x8x128xf32, #tpu.memory_space<vmem>>, vector<1x1x128xf32>
      tpu.vector_store %arg4[%c0_15, %c2, %c0_16], %2 {strides = array<i32>} : memref<1x8x128xf32, #tpu.memory_space<vmem>>, vector<1x1x128xf32>,
      %c0_17 = arith.constant 0 : index
      %c3 = arith.constant 3 : index
      %c0_18 = arith.constant 0 : index
      %23 = vector.load %arg4[%c0_17, %c3, %c0_18] : memref<1x8x128xf32, #tpu.memory_space<vmem>>, vector<1x1x128xf32>
      tpu.vector_store %arg4[%c0_17, %c3, %c0_18], %4 {strides = array<i32>} : memref<1x8x128xf32, #tpu.memory_space<vmem>>, vector<1x1x128xf32>,
      %cst_19 = arith.constant 0.000000e+00 : f32
      %24 = vector.broadcast %cst_19 : f32 to vector<1x4x128xf32>
      %c0_20 = arith.constant 0 : index
      %c4 = arith.constant 4 : index
      %c0_21 = arith.constant 0 : index
      %25 = vector.load %arg4[%c0_20, %c4, %c0_21] : memref<1x8x128xf32, #tpu.memory_space<vmem>>, vector<1x4x128xf32>
      tpu.vector_store %arg4[%c0_20, %c4, %c0_21], %24 {strides = array<i32>} : memref<1x8x128xf32, #tpu.memory_space<vmem>>, vector<1x4x128xf32>,
    } else {
    }
    %c0_i32_7 = arith.constant 0 : i32
    %17 = arith.cmpi sgt, %arg2, %c0_i32_7 : i32
    %18 = arith.extui %17 : i1 to i32
    %cst_8 = arith.constant 8.000000e+00 : f32
    %c0_i32_9 = arith.constant 0 : i32
    %19 = arith.cmpi ne, %18, %c0_i32_9 : i32
    scf.if %19 {
      %c8_i32 = arith.constant 8 : i32
      %20 = arith.muli %arg2, %c8_i32 : i32
      %21 = arith.sitofp %20 : i32 to f32
      %22 = arith.addf %21, %cst_8 : f32
      %23 = arith.divf %cst_8, %22 : f32
      %c0_10 = arith.constant 0 : index
      %c0_11 = arith.constant 0 : index
      %c0_12 = arith.constant 0 : index
      %24 = vector.load %arg4[%c0_10, %c0_11, %c0_12] : memref<1x8x128xf32, #tpu.memory_space<vmem>>, vector<1x1x128xf32>
      %25 = arith.subf %8, %24 : vector<1x1x128xf32>
      %26 = vector.broadcast %23 : f32 to vector<1x1x128xf32>
      %27 = arith.mulf %25, %26 : vector<1x1x128xf32>
      %28 = arith.addf %24, %27 : vector<1x1x128xf32>
      %c0_13 = arith.constant 0 : index
      %c0_14 = arith.constant 0 : index
      %c0_15 = arith.constant 0 : index
      %29 = vector.load %arg4[%c0_13, %c0_14, %c0_15] : memref<1x8x128xf32, #tpu.memory_space<vmem>>, vector<1x1x128xf32>
      tpu.vector_store %arg4[%c0_13, %c0_14, %c0_15], %28 {strides = array<i32>} : memref<1x8x128xf32, #tpu.memory_space<vmem>>, vector<1x1x128xf32>,
      %c0_16 = arith.constant 0 : index
      %c1 = arith.constant 1 : index
      %c0_17 = arith.constant 0 : index
      %30 = vector.load %arg4[%c0_16, %c1, %c0_17] : memref<1x8x128xf32, #tpu.memory_space<vmem>>, vector<1x1x128xf32>
      %31 = arith.addf %30, %13 : vector<1x1x128xf32>
      %32 = arith.mulf %25, %25 : vector<1x1x128xf32>
      %33 = arith.mulf %21, %23 : f32
      %34 = vector.broadcast %33 : f32 to vector<1x1x128xf32>
      %35 = arith.mulf %32, %34 : vector<1x1x128xf32>
      %36 = arith.addf %31, %35 : vector<1x1x128xf32>
      %c0_18 = arith.constant 0 : index
      %c1_19 = arith.constant 1 : index
      %c0_20 = arith.constant 0 : index
      %37 = vector.load %arg4[%c0_18, %c1_19, %c0_20] : memref<1x8x128xf32, #tpu.memory_space<vmem>>, vector<1x1x128xf32>
      tpu.vector_store %arg4[%c0_18, %c1_19, %c0_20], %36 {strides = array<i32>} : memref<1x8x128xf32, #tpu.memory_space<vmem>>, vector<1x1x128xf32>,
      %c0_21 = arith.constant 0 : index
      %c2 = arith.constant 2 : index
      %c0_22 = arith.constant 0 : index
      %38 = vector.load %arg4[%c0_21, %c2, %c0_22] : memref<1x8x128xf32, #tpu.memory_space<vmem>>, vector<1x1x128xf32>
      %39 = arith.minimumf %38, %2 : vector<1x1x128xf32>
      %c0_23 = arith.constant 0 : index
      %c2_24 = arith.constant 2 : index
      %c0_25 = arith.constant 0 : index
      %40 = vector.load %arg4[%c0_23, %c2_24, %c0_25] : memref<1x8x128xf32, #tpu.memory_space<vmem>>, vector<1x1x128xf32>
      tpu.vector_store %arg4[%c0_23, %c2_24, %c0_25], %39 {strides = array<i32>} : memref<1x8x128xf32, #tpu.memory_space<vmem>>, vector<1x1x128xf32>,
      %c0_26 = arith.constant 0 : index
      %c3 = arith.constant 3 : index
      %c0_27 = arith.constant 0 : index
      %41 = vector.load %arg4[%c0_26, %c3, %c0_27] : memref<1x8x128xf32, #tpu.memory_space<vmem>>, vector<1x1x128xf32>
      %42 = arith.maximumf %41, %4 : vector<1x1x128xf32>
      %c0_28 = arith.constant 0 : index
      %c3_29 = arith.constant 3 : index
      %c0_30 = arith.constant 0 : index
      %43 = vector.load %arg4[%c0_28, %c3_29, %c0_30] : memref<1x8x128xf32, #tpu.memory_space<vmem>>, vector<1x1x128xf32>
      tpu.vector_store %arg4[%c0_28, %c3_29, %c0_30], %42 {strides = array<i32>} : memref<1x8x128xf32, #tpu.memory_space<vmem>>, vector<1x1x128xf32>,
    } else {
    }
    return
  }
  func.func @transform_0(%arg0: i32, %arg1: i32, %arg2: i32) -> (i32, i32, i32) {
    %c0_i32 = arith.constant 0 : i32
    return %arg0, %arg2, %arg1 : i32, i32, i32
  }
  func.func @transform_1(%arg0: i32, %arg1: i32, %arg2: i32) -> (i32, i32, i32) {
    %c0_i32 = arith.constant 0 : i32
    %c0_i32_0 = arith.constant 0 : i32
    return %arg0, %c0_i32, %arg1 : i32, i32, i32
  }
}

</mosaic_0001>

<bundles_post_ra>
// kernel: tpu_custom_call.1
= control target key start
LH: loop header
LB: loop body
LE: loop exit
PB: predicated region body
PF: predicated region fallthrough
CT: control target
= control target key end

     0   :  { %6 = vsyncpa [#allocation3], 0  ;;  %s683_s0 = inlined_call_operand.hbm [shape: f32[2,8,128], index: 0, kind: input, shape index: {}]   ;;  %s684_s1 = inlined_call_operand.hbm [shape: f32[2,8,128], index: 1, kind: output, shape index: {}]  }
   0x1   :  { %8 = vsyncpa [#allocation3 + $0x1], 0 }
   0x2   :  { %9 = vsyncpa [#allocation4], 0 }
   0x3   :  { %11 = vsyncpa [#allocation4 + $0x1], 0  ;;  %s555_s6 = smov 0   ;;  %s557_s7 = smov 0  }
   0x4   :  { %s559_s8 = smov 0   ;;  %s561_s9 = smov 0  }
   0x5   :  { %s563_s10 = smov 0   ;;  %s565_s11 = smov 0  }
   0x6 LB: > { %s350_s12 = sadd.s32 4294967295, %s541_s11   ;;  %s351_s13 = sadd.s32 4294967294, %s541_s11   ;;  %s541_s11 = sphi %s565_s11, %s17_s11   ;;  %s537_s10 = sphi %s563_s10, %s693_s10   ;;  %s533_s9 = sphi %s561_s9, %s692_s9   ;;  %s529_s8 = sphi %s559_s8, %s691_s8   ;;  %s525_s7 = sphi %s557_s7, %s690_s7   ;;  %s521_s6 = sphi %s555_s6, %s689_s6  }
   0x7   : > { %s36_s14 = sadd.s32 1, %s537_s10  ;;  %s47_s15 = sadd.s32 1, %s529_s8 }
   0x8   : > { %p38_p0 = scmp.ge.s32.totalorder %s36_s14, 2  ;;  %p54_p1 = scmp.ne.s32.totalorder %s529_s8, %s525_s7 }
   0x9   : > { %p55_p2 = scmp.eq.s32.totalorder %s541_s11, 0  ;;  %p60_p3 = scmp.ne.s32.totalorder %s525_s7, %s521_s6 }
   0xa   : > { %s695_s14 = smov (%p38_p0, %s36_s14), 0  ;;  %p61_p5 = scmp.eq.s32.totalorder %s350_s12, 0 }
   0xb   : > { %p596_p4 = por %p55_p2, %p54_p1  ;;  %s40_s17 = ssub.s32 %s537_s10, %s695_s14 }
   0xc   : > { %p86_p6 = scmp.eq.s32.totalorder %s350_s12, 1  ;;  %p45_p7 = scmp.eq.s32.totalorder %s40_s17, 0 }
   0xd   : > { %p602_p8 = por %p61_p5, %p60_p3  ;;  %p92_p10 = scmp.eq.s32.totalorder %s351_s13, 1 }
   0xe   : > { %p606_p9 = por %p86_p6, %p54_p1  ;;  %p353_p12 = scmp.ge.s32.totalorder %s541_s11, 2 }
   0xf   : > { %s611_s20 = scalar_select %p45_p7, %s529_s8, %s47_s15  }
  0x10   : > { %p613_p11 = por %p92_p10, %p60_p3  ;;  %p375_p13 = scmp.lt.s32.totalorder %s541_s11, 2 }
  0x11   : > { %s112_s22 = sand.u32 1, %s529_s8   ;;  %s355_s24 = sshll.u32 %s537_s10, 3 }
  0x12   : > { %s354_s23 = sshll.u32 %s112_s22, 3  ;;  %s122_s27 = scalar_lea.hbm %s683_s0, %s355_s24 }
  0x13   : > { %s116_s28 = scalar_lea.vmem [#allocation2], %s354_s23  ;;  %s124_s30 = sshll.u32 %s122_s27, 4  ;;  %s125_s30 = int_to_ptr.hbm [resolvable:$true] %s124_s30 }
  0x14   : > { %s126_s29 = sshll.u32 %s116_s28, 4  ;;  %p368_p0 = pnand %p375_p13, %p596_p4  ;;  %s127_s29 = int_to_ptr.vmem [resolvable:$true] %s126_s29 }
  0x15   : > { %p356_p1 = scmp.ge.s32.totalorder %s541_s11, 1  ;;  %p131_p2 = scmp.lt.s32.totalorder %s541_s11, 3 }
  0x16   : > { %s113_s2 = scalar_lea.sflag [#allocation3], %s112_s22 }
  0x17   : > { %370 = dma.hbm_to_vmem [thread:$0]  (!%p368_p0), %s125_s30, 128, %s127_s29, %s113_s2  }
  0x18   : > { %p132_p3 = pnand %p356_p1, %p131_p2 }
  0x19   : > { %s629_s3 = sand.u32 (!%p132_p3), 1, %s525_s7  }
  0x1a   : > { %135 = sbr.rel (%p132_p3) target bundleno = 70 (0x46), region = 24  ;;  %s357_s4 = sshll.u32 (!%p132_p3), %s629_s3, 3 }
  0x1b   : > { %s138_s5 = scalar_lea.sflag (!%p132_p3), [#allocation3], %s629_s3  ;;  %s141_s12 = scalar_lea.vmem (!%p132_p3), [#allocation2], %s357_s4 }
  0x1f   : > { %512 = dma.done.wait (%p602_p8), %s138_s5, 128  }
  0x20   : > { %514 = vsyncadd (%p602_p8), %s138_s5, 4294967168  ;;  %v543_v0 = vmov 8.0   ;;  %s637_s13 = scalar_lea.vmem [#allocation5], %s357_s4  ;;  %v544_v1 = vmov 0.0   ;;  %v161_v3 = vld [vmem:[%s141_s12] sm:$0xff]  ;;  %s360_s15 = sshll.u32 %s533_s9, 3 }
  0x21   : > { %427 = vrcp.f32 %v543_v0  ;;  %204 = vst [vmem:[%s637_s13 + $0x4] sm:$0xf] %v544_v1  ;;  %v162_v4 = vrot.slane %v161_v3, 4  ;;  %s261_s18 = scalar_lea.hbm %s684_s1, %s360_s15  ;;  %s263_s22 = sshll.u32 %s637_s13, 4  ;;  %s264_s22 = int_to_ptr.vmem [resolvable:$true] %s263_s22 }
  0x22   : > { %s265_s23 = sshll.u32 %s261_s18, 4  ;;  %s250_s24 = scalar_lea.sflag [#allocation4], %s629_s3  ;;  %s266_s23 = int_to_ptr.hbm [resolvable:$true] %s265_s23 }
  0x23   : > { %v175_v6 = vadd.f32 %v162_v4, %v161_v3  ;;  %v163_v8 = vmin.f32 %v161_v3, %v162_v4  ;;  %v169_v9 = vmax.f32 %v161_v3, %v162_v4  ;;  %s473_s25 = sshra.s32 %s266_s23, 4  ;;  %s479_s28 = scalar_lea.hbm %s684_s1, 16  ;;  %s474_s25 = int_to_ptr.hbm [resolvable:$true] %s473_s25 }
  0x24   : > { %s475_s26 = scalar_lea.hbm %s474_s25, 8  ;;  %p480_p7 = scmp.lt.s32.totalorder %s474_s25, %s684_s1 }
  0x25   : > { %v176_v10 = vrot.slane %v175_v6, 2  ;;  %v164_v12 = vrot.slane %v163_v8, 2  ;;  %v170_v13 = vrot.slane %v169_v9, 2  ;;  %p476_p4 = scmp.ne.s32.totalorder %s474_s25, %s475_s26  ;;  %p481_p8 = scmp.lt.s32.totalorder %s479_s28, %s475_s26 }
  0x27   : > { %v428_v2 = vpop.eup %427  ;;  %v177_v14 = vadd.f32 %v176_v10, %v175_v6  ;;  %v165_v16 = vmin.f32 %v163_v8, %v164_v12  ;;  %v171_v17 = vmax.f32 %v169_v9, %v170_v13  ;;  %p477_p5 = pnand %p476_p4, %p606_p9  ;;  %p482_p10 = por %p481_p8, %p480_p7 }
  0x28   : > { %v181_v5 = vmul.f32 8.0, %v428_v2  ;;  %vm185_vm0 = vweird.f32 %v428_v2 }
  0x29   : > { %v178_v18 = vrot.slane %v177_v14, 1  ;;  %v166_v19 = vrot.slane %v165_v16, 1  ;;  %v172_v20 = vrot.slane %v171_v17, 1  ;;  %p478_p6 = pneg %p477_p5 }
  0x2a   : > { %v182_v7 = vsub.f32 1.0, %v181_v5 }
  0x2b   : > { %v179_v22 = vadd.f32 %v178_v18, %v177_v14  ;;  %v167_v23 = vmin.f32 %v165_v16, %v166_v19  ;;  %v173_v24 = vmax.f32 %v171_v17, %v172_v20  ;;  %p483_p13 = pnand %p482_p10, %p478_p6 }
  0x2c   : > { %v183_v11 = vmul.f32 %v428_v2, %v182_v7 }
  0x2d   : > { %202 = vst [vmem:[%s637_s13 + $0x2] sm:$0x1] %v167_v23 }
  0x2e   : > { %v184_v15 = vadd.f32 %v428_v2, %v183_v11  ;;  %203 = vst [vmem:[%s637_s13 + $0x3] sm:$0x1] %v173_v24 }
  0x30   : > { %v186_v21 = vsel %vm185_vm0, %v428_v2, %v184_v15 }
  0x31   : > { %v187_v25 = vmul.f32 %v186_v21, %v179_v22 }
  0x33   : > { %v188_v26 = vsub.f32 %v161_v3, %v187_v25  ;;  %200 = vst [vmem:[%s637_s13] sm:$0x1] %v187_v25 }
  0x35   : > { %v189_v27 = vmul.f32 %v188_v26, %v188_v26 }
  0x37   : > { %v190_v28 = vrot.slane %v189_v27, 4 }
  0x39   : > { %v191_v29 = vadd.f32 %v190_v28, %v189_v27 }
  0x3b   : > { %v192_v30 = vrot.slane %v191_v29, 2 }
  0x3d   : > { %v193_v31 = vadd.f32 %v192_v30, %v191_v29 }
  0x3f   : > { %v194_v32 = vrot.slane %v193_v31, 1 }
  0x41   : > { %v195_v33 = vadd.f32 %v194_v32, %v193_v31 }
  0x43   : > { %201 = vst [vmem:[%s637_s13 + $0x1] sm:$0x1] %v195_v33 }
  0x44   : > { %486 = shalt.err (!%p483_p13)
}
  0x45   : > { %365 = dma.vmem_to_hbm [thread:$0]  (%p606_p9), %s264_s22, 128, %s266_s23, %s250_s24  }
  0x46 PF: > { %s277_s2 = sand.u32 1, %s521_s6   ;;  %p372_p0 = pnand %p353_p12, %p613_p11 }
  0x47   : > { %s278_s3 = scalar_lea.sflag [#allocation4], %s277_s2 }
  0x48   : > { %p373_p1 = pneg %p372_p0 }
  0x4a   : > { %516 = dma.done.wait (%p373_p1), %s278_s3, 128  }
  0x4b   : > { %518 = vsyncadd (%p373_p1), %s278_s3, 4294967168  ;;  %s17_s11 = sadd.s32 1, %s541_s11   ;;  %s689_s6 = smov %s525_s7 }
  0x4c   : > { %p14_p2 = scmp.ge.s32.totalorder %s17_s11, 4   ;;  %s690_s7 = smov %s529_s8 }
  0x4d   : > { %s691_s8 = smov %s611_s20  ;;  %s692_s9 = smov %s537_s10 }
  0x4e   : > { %s693_s10 = smov %s695_s14  ;;  %16 = sbr.rel (!%p14_p2) target bundleno = 6 (0x6), region = 77 }
  0x53   :  { %284 = vsyncpa [#allocation3], 1 }
  0x54   :  { %286 = vsyncpa [#allocation3 + $0x1], 1 }
  0x55   :  { %287 = vsyncpa [#allocation4], 1 }
  0x56   :  { %289 = vsyncpa [#allocation4 + $0x1], 1 }

</bundles_post_ra>
